<compile_context>
chip_gen: v6e
topology: v6e:2x2x1
jax: 0.10.0
libtpu: 0.0.40
codegen_flags: <defaults>
</compile_context>

<pallas_src>
from functools import partial

import jax
import jax.numpy as jnp
import numpy as np
from jax.experimental import pallas as pl
from jax.experimental.pallas import tpu as pltpu


def _round_up8(n):
    return ((n + 7) // 8) * 8


def _build_tap_masks(H, W, Ho, Wo, stride):
    """(9, Ho*Wo) 0/1 masks on the OUTPUT grid: mask[k, yo*Wo+xo] == 1 iff the
    input sample (stride*yo+dy, stride*xo+dx) lies inside the HxW image, with
    k = (dy+1)*3 + (dx+1)."""
    yo = np.arange(Ho)[:, None]
    xo = np.arange(Wo)[None, :]
    m = np.zeros((9, Ho, Wo), np.float32)
    k = 0
    for dy in (-1, 0, 1):
        for dx in (-1, 0, 1):
            iy = stride * yo + dy
            ix = stride * xo + dx
            m[k] = ((iy >= 0) & (iy < H) & (ix >= 0) & (ix < W)).astype(np.float32)
            k += 1
    return m.reshape(9, Ho * Wo)


def _prep_conv_weight(w_oihw, scale, out_pad, in_pad, dtype):
    """Fold BN scale into an OIHW conv weight and reshape to (out_pad, 9*in_pad)
    matmul form with the K dimension ordered (kh, kw, cin)."""
    O, I = w_oihw.shape[0], w_oihw.shape[1]
    w = w_oihw * scale[:, None, None, None]
    w = jnp.pad(w, ((0, out_pad - O), (0, in_pad - I), (0, 0), (0, 0)))
    return jnp.transpose(w, (0, 2, 3, 1)).reshape(out_pad, 9 * in_pad).astype(dtype)


def _fused_block_kernel(*refs, stride, Wo, has_downsample, share_masks,
                        m1_ones, m2_ones, matmul_dtype):
    it = iter(refs)
    xp_ref = next(it)                                   # (nphase, Cin_p, L)
    m1_ref = next(it)                                   # (9, L)
    m2_ref = m1_ref if share_masks else next(it)        # (9, L)
    w1_ref, b1_ref = next(it), next(it)
    w2_ref, b2_ref = next(it), next(it)
    wd_ref, bd_ref = (next(it), next(it)) if has_downsample else (None, None)
    out_ref = next(it)                                  # (Pp, L)

    dt = matmul_dtype
    phases = [xp_ref[i] for i in range(xp_ref.shape[0])]   # each (Cin_p, L), f32
    m1 = m1_ref[...]
    m2 = m1 if share_masks else m2_ref[...]

    def conv3x3(tap_fn, masks, ones, w_ref, b_ref):
        """3x3 'same' conv as a single MXU dot.  tap_fn(dy,dx) -> (base, ry, rx):
        the tap is base rolled by (ry, rx) on the output grid, border-masked."""
        taps, k = [], 0
        for dy in (-1, 0, 1):
            for dx in (-1, 0, 1):
                base, ry, rx = tap_fn(dy, dx)
                shift = ry * Wo + rx
                t = base if shift == 0 else jnp.roll(base, -shift, axis=-1)
                if not ones[k]:                          # skip all-ones masks
                    t = t * masks[k:k + 1, :]
                taps.append(t.astype(dt))
                k += 1
        patches = jnp.concatenate(taps, axis=0)          # (9*C, L), tile-aligned
        return jnp.dot(w_ref[...].astype(dt), patches,
                       preferred_element_type=jnp.float32) + b_ref[...]

    # conv1 (+BN1 folded) + ReLU.  Taps of the strided conv are rolls of the
    # stride-phase planes of x, already on the output grid (no wasted FLOPs).
    def tap1(dy, dx):
        p, q = dy % stride, dx % stride
        return phases[p * stride + q], (dy - p) // stride, (dx - q) // stride

    out1 = jnp.maximum(conv3x3(tap1, m1, m1_ones, w1_ref, b1_ref), 0.0)

    # conv2 (+BN2 folded).  Dropout2d is identity in eval mode.
    out2 = conv3x3(lambda dy, dx: (out1, dy, dx), m2, m2_ones, w2_ref, b2_ref)

    # Residual branch: x subsampled on the output grid == phase (0,0), free.
    x00 = phases[0]
    if has_downsample:
        res = jnp.dot(wd_ref[...].astype(dt), x00.astype(dt),
                      preferred_element_type=jnp.float32) + bd_ref[...]
    else:
        res = x00                                        # identity (Cin_p == Pp)

    out_ref[...] = jnp.maximum(out2 + res, 0.0)


@partial(jax.jit, static_argnames=("stride", "matmul_dtype", "images_per_step"))
def enhanced_basic_block_forward(x_nchw, params, *, stride=1,
                                 matmul_dtype=jnp.float32, images_per_step=None):
    """EnhancedBasicBlock.forward (eval mode), NCHW in / NCHW out."""
    x = x_nchw.astype(jnp.float32)
    N, Cin, H, W = x.shape
    planes = params["w1"].shape[0]
    s = stride
    Ho = (H - 1) // s + 1
    Wo = (W - 1) // s + 1
    has_downsample = (s != 1) or (Cin != planes)
    share_masks = (s == 1)

    Cin_p = _round_up8(Cin)
    Pp = _round_up8(planes)

    ips = N if images_per_step is None else images_per_step
    if N % ips != 0:
        raise ValueError("images_per_step must divide the batch size")
    G = N // ips
    Lg = ips * Ho * Wo
    if G > 1 and Lg % 128 != 0:
        raise ValueError("per-step lane extent must be a multiple of 128 when grid > 1")

    # --- weights: BN scales folded in, channels padded to 8-sublane tiles ----
    w1 = _prep_conv_weight(params["w1"], params["scale1"], Pp, Cin_p, matmul_dtype)
    w2 = _prep_conv_weight(params["w2"], params["scale2"], Pp, Pp, matmul_dtype)
    wd = jnp.pad(params["wd"] * params["scale_d"][:, None],
                 ((0, Pp - planes), (0, Cin_p - Cin))).astype(matmul_dtype)
    b1 = jnp.pad(params["bias1"], (0, Pp - planes)).reshape(Pp, 1)
    b2 = jnp.pad(params["bias2"], (0, Pp - planes)).reshape(Pp, 1)
    bd = jnp.pad(params["bias_d"], (0, Pp - planes)).reshape(Pp, 1)

    # --- input layout: channels-first phase planes on the OUTPUT grid --------
    # lanes ordered (image, yo, xo); phase (p, q) holds x[:, :, p::s, q::s].
    xT = jnp.transpose(x, (1, 0, 2, 3))                       # (Cin, N, H, W)
    xT = jnp.pad(xT, ((0, Cin_p - Cin), (0, 0),
                      (0, Ho * s - H), (0, Wo * s - W)))
    if s == 1:
        xp = xT.reshape(1, Cin_p, N * Ho * Wo)
    else:
        xr = xT.reshape(Cin_p, N, Ho, s, Wo, s)
        xp = jnp.stack([xr[:, :, :, p, :, q]
                        for p in range(s) for q in range(s)], axis=0)
        xp = xp.reshape(s * s, Cin_p, N * Ho * Wo)
    nphase = xp.shape[0]

    # --- 0/1 tap masks (per image, tiled across the lane-folded group) -------
    m1_img = _build_tap_masks(H, W, Ho, Wo, s)
    m1_ones = tuple(bool(np.all(m1_img[k] == 1.0)) for k in range(9))
    m1g = jnp.asarray(np.tile(m1_img, (1, ips)))
    if share_masks:
        m2_ones, m2g = m1_ones, None
    else:
        m2_img = _build_tap_masks(Ho, Wo, Ho, Wo, 1)
        m2_ones = tuple(bool(np.all(m2_img[k] == 1.0)) for k in range(9))
        m2g = jnp.asarray(np.tile(m2_img, (1, ips)))

    # --- pallas_call: grid over image groups (all folded into one by default)
    operands = [xp, m1g]
    in_specs = [
        pl.BlockSpec((nphase, Cin_p, Lg), lambda g: (0, 0, g)),   # x phases
        pl.BlockSpec((9, Lg), lambda g: (0, 0)),                  # conv1 masks
    ]
    if not share_masks:
        operands.append(m2g)
        in_specs.append(pl.BlockSpec((9, Lg), lambda g: (0, 0)))  # conv2 masks
    operands += [w1, b1, w2, b2]
    in_specs += [
        pl.BlockSpec((Pp, 9 * Cin_p), lambda g: (0, 0)),          # w1 (BN1-scaled)
        pl.BlockSpec((Pp, 1), lambda g: (0, 0)),                  # b1
        pl.BlockSpec((Pp, 9 * Pp), lambda g: (0, 0)),             # w2 (BN2-scaled)
        pl.BlockSpec((Pp, 1), lambda g: (0, 0)),                  # b2
    ]
    if has_downsample:
        operands += [wd, bd]
        in_specs += [
            pl.BlockSpec((Pp, Cin_p), lambda g: (0, 0)),          # wd (BNd-scaled)
            pl.BlockSpec((Pp, 1), lambda g: (0, 0)),              # bd
        ]

    out_flat = pl.pallas_call(
        partial(_fused_block_kernel, stride=s, Wo=Wo,
                has_downsample=has_downsample, share_masks=share_masks,
                m1_ones=m1_ones, m2_ones=m2_ones, matmul_dtype=matmul_dtype),
        out_shape=jax.ShapeDtypeStruct((Pp, N * Ho * Wo), jnp.float32),
        grid=(G,),
        in_specs=in_specs,
        out_specs=pl.BlockSpec((Pp, Lg), lambda g: (0, g)),
        compiler_params=pltpu.CompilerParams(
            dimension_semantics=("parallel",),
            vmem_limit_bytes=32 * 1024 * 1024),
    )(*operands)

    out = out_flat[:planes].reshape(planes, N, Ho, Wo)
    return jnp.transpose(out, (1, 0, 2, 3))               # back to NCHW


# ----------------------------- param construction --------------------------- #

def _fold_bn(gamma, beta, mean, var, eps=1e-5):
    scale = gamma / jnp.sqrt(var + eps)
    bias = beta - mean * scale
    return scale, bias


def make_params(key, in_planes, planes):
    ks = jax.random.split(key, 6)
    p = {}
    p["w1"] = 0.1 * jax.random.normal(ks[0], (planes, in_planes, 3, 3), jnp.float32)
    p["w2"] = 0.1 * jax.random.normal(ks[1], (planes, planes, 3, 3), jnp.float32)
    p["wd"] = 0.1 * jax.random.normal(ks[2], (planes, in_planes), jnp.float32)

    def bn(k):
        k1, k2, k3, k4 = jax.random.split(k, 4)
        gamma = 1.0 + 0.1 * jax.random.normal(k1, (planes,), jnp.float32)
        beta = 0.1 * jax.random.normal(k2, (planes,), jnp.float32)
        mean = 0.05 * jax.random.normal(k3, (planes,), jnp.float32)
        var = 1.0 + 0.1 * jnp.abs(jax.random.normal(k4, (planes,), jnp.float32))
        return _fold_bn(gamma, beta, mean, var)

    p["scale1"], p["bias1"] = bn(ks[3])
    p["scale2"], p["bias2"] = bn(ks[4])
    p["scale_d"], p["bias_d"] = bn(ks[5])
    return p


# --------------------------------- reference -------------------------------- #

def ref_forward(x_nchw, p, *, stride=1):
    x = x_nchw.astype(jnp.float32)
    Cin, planes = x.shape[1], p["w1"].shape[0]

    def conv(inp, w, s, pad):
        return jax.lax.conv_general_dilated(
            inp, w, (s, s), pad, dimension_numbers=("NCHW", "OIHW", "NCHW"))

    def bn(z, scale, bias):
        return z * scale[None, :, None, None] + bias[None, :, None, None]

    if stride != 1 or Cin != planes:
        res = bn(conv(x, p["wd"][:, :, None, None], stride, "VALID"),
                 p["scale_d"], p["bias_d"])
    else:
        res = x
    out = jnp.maximum(bn(conv(x, p["w1"], stride, ((1, 1), (1, 1))),
                         p["scale1"], p["bias1"]), 0.0)
    out = bn(conv(out, p["w2"], 1, ((1, 1), (1, 1))), p["scale2"], p["bias2"])
    return jnp.maximum(out + res, 0.0)


# ----------------------------------- main ----------------------------------- #

if __name__ == "__main__":
    key = jax.random.PRNGKey(0)
    kx, kp1, kp2, kp3 = jax.random.split(key, 4)

    # PyTorch-style NCHW input
    x = jax.random.normal(kx, (2, 4, 16, 16), jnp.float32)

    # A: in_planes == planes, stride 1 -> identity residual
    pa = make_params(kp1, in_planes=4, planes=4)
    out_a = jax.block_until_ready(enhanced_basic_block_forward(x, pa, stride=1))
    np.testing.assert_allclose(np.asarray(out_a),
                               np.asarray(ref_forward(x, pa, stride=1)),
                               rtol=1e-4, atol=1e-4)

    # B: in_planes != planes, stride 1 -> 1x1 conv + BN downsample
    pb = make_params(kp2, in_planes=4, planes=8)
    out_b = jax.block_until_ready(enhanced_basic_block_forward(x, pb, stride=1))
    np.testing.assert_allclose(np.asarray(out_b),
                               np.asarray(ref_forward(x, pb, stride=1)),
                               rtol=1e-4, atol=1e-4)

    # C: stride 2 + channel change -> strided convs + 1x1 downsample
    pc = make_params(kp3, in_planes=4, planes=8)
    out_c = jax.block_until_ready(enhanced_basic_block_forward(x, pc, stride=2))
    np.testing.assert_allclose(np.asarray(out_c),
                               np.asarray(ref_forward(x, pc, stride=2)),
                               rtol=1e-4, atol=1e-4)

    # D: bf16 MXU operands with f32 accumulation (v6e/v7x fast path).
    out_c16 = jax.block_until_ready(
        enhanced_basic_block_forward(x, pc, stride=2, matmul_dtype=jnp.bfloat16))
    np.testing.assert_allclose(np.asarray(out_c16),
                               np.asarray(ref_forward(x, pc, stride=2)),
                               rtol=5e-2, atol=5e-2)

    print("KERNEL_OK")
</pallas_src>

<mosaic_0001>
module attributes {stable_mosaic.version = 11 : i64} {
  func.func @_fused_block_kernel(%arg0: i32, %arg1: memref<1x8x512xf32, #tpu.memory_space<vmem>>, %arg2: memref<9x512xf32, #tpu.memory_space<vmem>>, %arg3: memref<8x72xf32, #tpu.memory_space<vmem>>, %arg4: memref<8x1xf32, #tpu.memory_space<vmem>>, %arg5: memref<8x72xf32, #tpu.memory_space<vmem>>, %arg6: memref<8x1xf32, #tpu.memory_space<vmem>>, %arg7: memref<8x512xf32, #tpu.memory_space<vmem>>) attributes {dimension_semantics = [#tpu.dimension_semantics<parallel>], iteration_bounds = array<i64: 1>, scalar_prefetch = 0 : i64, scratch_operands = 0 : i64, tpu.core_type = #tpu.core_type<tc>, window_params = [{transform_indices = @transform_0, window_bounds = array<i64: 1, 8, 512>}, {pipeline_mode = #tpu.pipeline_mode<synchronous>, transform_indices = @transform_1, window_bounds = array<i64: 9, 512>}, {pipeline_mode = #tpu.pipeline_mode<synchronous>, transform_indices = @transform_2, window_bounds = array<i64: 8, 72>}, {pipeline_mode = #tpu.pipeline_mode<synchronous>, transform_indices = @transform_3, window_bounds = array<i64: 8, 1>}, {pipeline_mode = #tpu.pipeline_mode<synchronous>, transform_indices = @transform_4, window_bounds = array<i64: 8, 72>}, {pipeline_mode = #tpu.pipeline_mode<synchronous>, transform_indices = @transform_5, window_bounds = array<i64: 8, 1>}, {transform_indices = @transform_6, window_bounds = array<i64: 8, 512>}]} {
    %c0 = arith.constant 0 : index
    %c0_0 = arith.constant 0 : index
    %c0_1 = arith.constant 0 : index
    %0 = vector.load %arg1[%c0, %c0_0, %c0_1] : memref<1x8x512xf32, #tpu.memory_space<vmem>>, vector<1x8x512xf32>
    %1 = vector.shape_cast %0 : vector<1x8x512xf32> to vector<8x512xf32>
    %c0_2 = arith.constant 0 : index
    %c0_3 = arith.constant 0 : index
    %2 = vector.load %arg2[%c0_2, %c0_3] : memref<9x512xf32, #tpu.memory_space<vmem>>, vector<9x512xf32>
    %3 = vector.extract_strided_slice %1 {offsets = [0, 495], sizes = [8, 17], strides = [1, 1]} : vector<8x512xf32> to vector<8x17xf32>
    %4 = vector.extract_strided_slice %1 {offsets = [0, 0], sizes = [8, 495], strides = [1, 1]} : vector<8x512xf32> to vector<8x495xf32>
    %5 = tpu.concatenate %3, %4 in 1 : vector<8x17xf32>, vector<8x495xf32> -> vector<8x512xf32>
    %6 = vector.extract_strided_slice %2 {offsets = [0, 0], sizes = [1, 512], strides = [1, 1]} : vector<9x512xf32> to vector<1x512xf32>
    %7 = vector.broadcast %6 : vector<1x512xf32> to vector<8x512xf32>
    %8 = arith.mulf %5, %7 : vector<8x512xf32>
    %9 = vector.extract_strided_slice %1 {offsets = [0, 496], sizes = [8, 16], strides = [1, 1]} : vector<8x512xf32> to vector<8x16xf32>
    %10 = vector.extract_strided_slice %1 {offsets = [0, 0], sizes = [8, 496], strides = [1, 1]} : vector<8x512xf32> to vector<8x496xf32>
    %11 = tpu.concatenate %9, %10 in 1 : vector<8x16xf32>, vector<8x496xf32> -> vector<8x512xf32>
    %12 = vector.extract_strided_slice %2 {offsets = [1, 0], sizes = [1, 512], strides = [1, 1]} : vector<9x512xf32> to vector<1x512xf32>
    %13 = vector.broadcast %12 : vector<1x512xf32> to vector<8x512xf32>
    %14 = arith.mulf %11, %13 : vector<8x512xf32>
    %15 = vector.extract_strided_slice %1 {offsets = [0, 497], sizes = [8, 15], strides = [1, 1]} : vector<8x512xf32> to vector<8x15xf32>
    %16 = vector.extract_strided_slice %1 {offsets = [0, 0], sizes = [8, 497], strides = [1, 1]} : vector<8x512xf32> to vector<8x497xf32>
    %17 = tpu.concatenate %15, %16 in 1 : vector<8x15xf32>, vector<8x497xf32> -> vector<8x512xf32>
    %18 = vector.extract_strided_slice %2 {offsets = [2, 0], sizes = [1, 512], strides = [1, 1]} : vector<9x512xf32> to vector<1x512xf32>
    %19 = vector.broadcast %18 : vector<1x512xf32> to vector<8x512xf32>
    %20 = arith.mulf %17, %19 : vector<8x512xf32>
    %21 = vector.extract_strided_slice %1 {offsets = [0, 511], sizes = [8, 1], strides = [1, 1]} : vector<8x512xf32> to vector<8x1xf32>
    %22 = vector.extract_strided_slice %1 {offsets = [0, 0], sizes = [8, 511], strides = [1, 1]} : vector<8x512xf32> to vector<8x511xf32>
    %23 = tpu.concatenate %21, %22 in 1 : vector<8x1xf32>, vector<8x511xf32> -> vector<8x512xf32>
    %24 = vector.extract_strided_slice %2 {offsets = [3, 0], sizes = [1, 512], strides = [1, 1]} : vector<9x512xf32> to vector<1x512xf32>
    %25 = vector.broadcast %24 : vector<1x512xf32> to vector<8x512xf32>
    %26 = arith.mulf %23, %25 : vector<8x512xf32>
    %27 = vector.extract_strided_slice %1 {offsets = [0, 1], sizes = [8, 511], strides = [1, 1]} : vector<8x512xf32> to vector<8x511xf32>
    %28 = vector.extract_strided_slice %1 {offsets = [0, 0], sizes = [8, 1], strides = [1, 1]} : vector<8x512xf32> to vector<8x1xf32>
    %29 = tpu.concatenate %27, %28 in 1 : vector<8x511xf32>, vector<8x1xf32> -> vector<8x512xf32>
    %30 = vector.extract_strided_slice %2 {offsets = [5, 0], sizes = [1, 512], strides = [1, 1]} : vector<9x512xf32> to vector<1x512xf32>
    %31 = vector.broadcast %30 : vector<1x512xf32> to vector<8x512xf32>
    %32 = arith.mulf %29, %31 : vector<8x512xf32>
    %33 = vector.extract_strided_slice %1 {offsets = [0, 15], sizes = [8, 497], strides = [1, 1]} : vector<8x512xf32> to vector<8x497xf32>
    %34 = vector.extract_strided_slice %1 {offsets = [0, 0], sizes = [8, 15], strides = [1, 1]} : vector<8x512xf32> to vector<8x15xf32>
    %35 = tpu.concatenate %33, %34 in 1 : vector<8x497xf32>, vector<8x15xf32> -> vector<8x512xf32>
    %36 = vector.extract_strided_slice %2 {offsets = [6, 0], sizes = [1, 512], strides = [1, 1]} : vector<9x512xf32> to vector<1x512xf32>
    %37 = vector.broadcast %36 : vector<1x512xf32> to vector<8x512xf32>
    %38 = arith.mulf %35, %37 : vector<8x512xf32>
    %39 = vector.extract_strided_slice %1 {offsets = [0, 16], sizes = [8, 496], strides = [1, 1]} : vector<8x512xf32> to vector<8x496xf32>
    %40 = vector.extract_strided_slice %1 {offsets = [0, 0], sizes = [8, 16], strides = [1, 1]} : vector<8x512xf32> to vector<8x16xf32>
    %41 = tpu.concatenate %39, %40 in 1 : vector<8x496xf32>, vector<8x16xf32> -> vector<8x512xf32>
    %42 = vector.extract_strided_slice %2 {offsets = [7, 0], sizes = [1, 512], strides = [1, 1]} : vector<9x512xf32> to vector<1x512xf32>
    %43 = vector.broadcast %42 : vector<1x512xf32> to vector<8x512xf32>
    %44 = arith.mulf %41, %43 : vector<8x512xf32>
    %45 = vector.extract_strided_slice %1 {offsets = [0, 17], sizes = [8, 495], strides = [1, 1]} : vector<8x512xf32> to vector<8x495xf32>
    %46 = vector.extract_strided_slice %1 {offsets = [0, 0], sizes = [8, 17], strides = [1, 1]} : vector<8x512xf32> to vector<8x17xf32>
    %47 = tpu.concatenate %45, %46 in 1 : vector<8x495xf32>, vector<8x17xf32> -> vector<8x512xf32>
    %48 = vector.extract_strided_slice %2 {offsets = [8, 0], sizes = [1, 512], strides = [1, 1]} : vector<9x512xf32> to vector<1x512xf32>
    %49 = vector.broadcast %48 : vector<1x512xf32> to vector<8x512xf32>
    %50 = arith.mulf %47, %49 : vector<8x512xf32>
    %51 = tpu.concatenate %8, %14, %20, %26, %1, %32, %38, %44, %50 in 0 : vector<8x512xf32>, vector<8x512xf32>, vector<8x512xf32>, vector<8x512xf32>, vector<8x512xf32>, vector<8x512xf32>, vector<8x512xf32>, vector<8x512xf32>, vector<8x512xf32> -> vector<72x512xf32>
    %c0_4 = arith.constant 0 : index
    %c0_5 = arith.constant 0 : index
    %52 = vector.load %arg3[%c0_4, %c0_5] : memref<8x72xf32, #tpu.memory_space<vmem>>, vector<8x72xf32>
    %cst = arith.constant dense<0.000000e+00> : vector<8x512xf32>
    %53 = tpu.matmul %52, %51, %cst {dimension_numbers = #tpu.dot_dimension_numbers<[1], [0], [0], [1], [0, 0, 1, 1], [], []>} : vector<8x72xf32>, vector<72x512xf32>, vector<8x512xf32> -> vector<8x512xf32>
    %c0_6 = arith.constant 0 : index
    %c0_7 = arith.constant 0 : index
    %54 = vector.load %arg4[%c0_6, %c0_7] : memref<8x1xf32, #tpu.memory_space<vmem>>, vector<8x1xf32>
    %55 = vector.broadcast %54 : vector<8x1xf32> to vector<8x512xf32>
    %56 = arith.addf %53, %55 : vector<8x512xf32>
    %cst_8 = arith.constant 0.000000e+00 : f32
    %57 = vector.broadcast %cst_8 : f32 to vector<8x512xf32>
    %58 = arith.maximumf %56, %57 : vector<8x512xf32>
    %59 = vector.extract_strided_slice %58 {offsets = [0, 495], sizes = [8, 17], strides = [1, 1]} : vector<8x512xf32> to vector<8x17xf32>
    %60 = vector.extract_strided_slice %58 {offsets = [0, 0], sizes = [8, 495], strides = [1, 1]} : vector<8x512xf32> to vector<8x495xf32>
    %61 = tpu.concatenate %59, %60 in 1 : vector<8x17xf32>, vector<8x495xf32> -> vector<8x512xf32>
    %62 = vector.extract_strided_slice %2 {offsets = [0, 0], sizes = [1, 512], strides = [1, 1]} : vector<9x512xf32> to vector<1x512xf32>
    %63 = vector.broadcast %62 : vector<1x512xf32> to vector<8x512xf32>
    %64 = arith.mulf %61, %63 : vector<8x512xf32>
    %65 = vector.extract_strided_slice %58 {offsets = [0, 496], sizes = [8, 16], strides = [1, 1]} : vector<8x512xf32> to vector<8x16xf32>
    %66 = vector.extract_strided_slice %58 {offsets = [0, 0], sizes = [8, 496], strides = [1, 1]} : vector<8x512xf32> to vector<8x496xf32>
    %67 = tpu.concatenate %65, %66 in 1 : vector<8x16xf32>, vector<8x496xf32> -> vector<8x512xf32>
    %68 = vector.extract_strided_slice %2 {offsets = [1, 0], sizes = [1, 512], strides = [1, 1]} : vector<9x512xf32> to vector<1x512xf32>
    %69 = vector.broadcast %68 : vector<1x512xf32> to vector<8x512xf32>
    %70 = arith.mulf %67, %69 : vector<8x512xf32>
    %71 = vector.extract_strided_slice %58 {offsets = [0, 497], sizes = [8, 15], strides = [1, 1]} : vector<8x512xf32> to vector<8x15xf32>
    %72 = vector.extract_strided_slice %58 {offsets = [0, 0], sizes = [8, 497], strides = [1, 1]} : vector<8x512xf32> to vector<8x497xf32>
    %73 = tpu.concatenate %71, %72 in 1 : vector<8x15xf32>, vector<8x497xf32> -> vector<8x512xf32>
    %74 = vector.extract_strided_slice %2 {offsets = [2, 0], sizes = [1, 512], strides = [1, 1]} : vector<9x512xf32> to vector<1x512xf32>
    %75 = vector.broadcast %74 : vector<1x512xf32> to vector<8x512xf32>
    %76 = arith.mulf %73, %75 : vector<8x512xf32>
    %77 = vector.extract_strided_slice %58 {offsets = [0, 511], sizes = [8, 1], strides = [1, 1]} : vector<8x512xf32> to vector<8x1xf32>
    %78 = vector.extract_strided_slice %58 {offsets = [0, 0], sizes = [8, 511], strides = [1, 1]} : vector<8x512xf32> to vector<8x511xf32>
    %79 = tpu.concatenate %77, %78 in 1 : vector<8x1xf32>, vector<8x511xf32> -> vector<8x512xf32>
    %80 = vector.extract_strided_slice %2 {offsets = [3, 0], sizes = [1, 512], strides = [1, 1]} : vector<9x512xf32> to vector<1x512xf32>
    %81 = vector.broadcast %80 : vector<1x512xf32> to vector<8x512xf32>
    %82 = arith.mulf %79, %81 : vector<8x512xf32>
    %83 = vector.extract_strided_slice %58 {offsets = [0, 1], sizes = [8, 511], strides = [1, 1]} : vector<8x512xf32> to vector<8x511xf32>
    %84 = vector.extract_strided_slice %58 {offsets = [0, 0], sizes = [8, 1], strides = [1, 1]} : vector<8x512xf32> to vector<8x1xf32>
    %85 = tpu.concatenate %83, %84 in 1 : vector<8x511xf32>, vector<8x1xf32> -> vector<8x512xf32>
    %86 = vector.extract_strided_slice %2 {offsets = [5, 0], sizes = [1, 512], strides = [1, 1]} : vector<9x512xf32> to vector<1x512xf32>
    %87 = vector.broadcast %86 : vector<1x512xf32> to vector<8x512xf32>
    %88 = arith.mulf %85, %87 : vector<8x512xf32>
    %89 = vector.extract_strided_slice %58 {offsets = [0, 15], sizes = [8, 497], strides = [1, 1]} : vector<8x512xf32> to vector<8x497xf32>
    %90 = vector.extract_strided_slice %58 {offsets = [0, 0], sizes = [8, 15], strides = [1, 1]} : vector<8x512xf32> to vector<8x15xf32>
    %91 = tpu.concatenate %89, %90 in 1 : vector<8x497xf32>, vector<8x15xf32> -> vector<8x512xf32>
    %92 = vector.extract_strided_slice %2 {offsets = [6, 0], sizes = [1, 512], strides = [1, 1]} : vector<9x512xf32> to vector<1x512xf32>
    %93 = vector.broadcast %92 : vector<1x512xf32> to vector<8x512xf32>
    %94 = arith.mulf %91, %93 : vector<8x512xf32>
    %95 = vector.extract_strided_slice %58 {offsets = [0, 16], sizes = [8, 496], strides = [1, 1]} : vector<8x512xf32> to vector<8x496xf32>
    %96 = vector.extract_strided_slice %58 {offsets = [0, 0], sizes = [8, 16], strides = [1, 1]} : vector<8x512xf32> to vector<8x16xf32>
    %97 = tpu.concatenate %95, %96 in 1 : vector<8x496xf32>, vector<8x16xf32> -> vector<8x512xf32>
    %98 = vector.extract_strided_slice %2 {offsets = [7, 0], sizes = [1, 512], strides = [1, 1]} : vector<9x512xf32> to vector<1x512xf32>
    %99 = vector.broadcast %98 : vector<1x512xf32> to vector<8x512xf32>
    %100 = arith.mulf %97, %99 : vector<8x512xf32>
    %101 = vector.extract_strided_slice %58 {offsets = [0, 17], sizes = [8, 495], strides = [1, 1]} : vector<8x512xf32> to vector<8x495xf32>
    %102 = vector.extract_strided_slice %58 {offsets = [0, 0], sizes = [8, 17], strides = [1, 1]} : vector<8x512xf32> to vector<8x17xf32>
    %103 = tpu.concatenate %101, %102 in 1 : vector<8x495xf32>, vector<8x17xf32> -> vector<8x512xf32>
    %104 = vector.extract_strided_slice %2 {offsets = [8, 0], sizes = [1, 512], strides = [1, 1]} : vector<9x512xf32> to vector<1x512xf32>
    %105 = vector.broadcast %104 : vector<1x512xf32> to vector<8x512xf32>
    %106 = arith.mulf %103, %105 : vector<8x512xf32>
    %107 = tpu.concatenate %64, %70, %76, %82, %58, %88, %94, %100, %106 in 0 : vector<8x512xf32>, vector<8x512xf32>, vector<8x512xf32>, vector<8x512xf32>, vector<8x512xf32>, vector<8x512xf32>, vector<8x512xf32>, vector<8x512xf32>, vector<8x512xf32> -> vector<72x512xf32>
    %c0_9 = arith.constant 0 : index
    %c0_10 = arith.constant 0 : index
    %108 = vector.load %arg5[%c0_9, %c0_10] : memref<8x72xf32, #tpu.memory_space<vmem>>, vector<8x72xf32>
    %cst_11 = arith.constant dense<0.000000e+00> : vector<8x512xf32>
    %109 = tpu.matmul %108, %107, %cst_11 {dimension_numbers = #tpu.dot_dimension_numbers<[1], [0], [0], [1], [0, 0, 1, 1], [], []>} : vector<8x72xf32>, vector<72x512xf32>, vector<8x512xf32> -> vector<8x512xf32>
    %c0_12 = arith.constant 0 : index
    %c0_13 = arith.constant 0 : index
    %110 = vector.load %arg6[%c0_12, %c0_13] : memref<8x1xf32, #tpu.memory_space<vmem>>, vector<8x1xf32>
    %111 = vector.broadcast %110 : vector<8x1xf32> to vector<8x512xf32>
    %112 = arith.addf %109, %111 : vector<8x512xf32>
    %113 = arith.addf %112, %1 : vector<8x512xf32>
    %cst_14 = arith.constant 0.000000e+00 : f32
    %114 = vector.broadcast %cst_14 : f32 to vector<8x512xf32>
    %115 = arith.maximumf %113, %114 : vector<8x512xf32>
    %c0_15 = arith.constant 0 : index
    %c0_16 = arith.constant 0 : index
    %116 = vector.load %arg7[%c0_15, %c0_16] : memref<8x512xf32, #tpu.memory_space<vmem>>, vector<8x512xf32>
    tpu.vector_store %arg7[%c0_15, %c0_16], %115 {strides = array<i32>} : memref<8x512xf32, #tpu.memory_space<vmem>>, vector<8x512xf32>,
    return
  }
  func.func @transform_0(%arg0: i32) -> (i32, i32, i32) {
    %c0_i32 = arith.constant 0 : i32
    %c0_i32_0 = arith.constant 0 : i32
    %c0_i32_1 = arith.constant 0 : i32
    return %c0_i32, %c0_i32_0, %arg0 : i32, i32, i32
  }
  func.func @transform_1(%arg0: i32) -> (i32, i32) {
    %c0_i32 = arith.constant 0 : i32
    %c0_i32_0 = arith.constant 0 : i32
    %c0_i32_1 = arith.constant 0 : i32
    return %c0_i32, %c0_i32_0 : i32, i32
  }
  func.func @transform_2(%arg0: i32) -> (i32, i32) {
    %c0_i32 = arith.constant 0 : i32
    %c0_i32_0 = arith.constant 0 : i32
    %c0_i32_1 = arith.constant 0 : i32
    return %c0_i32, %c0_i32_0 : i32, i32
  }
  func.func @transform_3(%arg0: i32) -> (i32, i32) {
    %c0_i32 = arith.constant 0 : i32
    %c0_i32_0 = arith.constant 0 : i32
    %c0_i32_1 = arith.constant 0 : i32
    return %c0_i32, %c0_i32_0 : i32, i32
  }
  func.func @transform_4(%arg0: i32) -> (i32, i32) {
    %c0_i32 = arith.constant 0 : i32
    %c0_i32_0 = arith.constant 0 : i32
    %c0_i32_1 = arith.constant 0 : i32
    return %c0_i32, %c0_i32_0 : i32, i32
  }
  func.func @transform_5(%arg0: i32) -> (i32, i32) {
    %c0_i32 = arith.constant 0 : i32
    %c0_i32_0 = arith.constant 0 : i32
    %c0_i32_1 = arith.constant 0 : i32
    return %c0_i32, %c0_i32_0 : i32, i32
  }
  func.func @transform_6(%arg0: i32) -> (i32, i32) {
    %c0_i32 = arith.constant 0 : i32
    %c0_i32_0 = arith.constant 0 : i32
    return %c0_i32, %arg0 : i32, i32
  }
}

</mosaic_0001>

<bundles_post_ra>
// kernel: enhanced_basic_block_forward.1
= control target key start
LH: loop header
LB: loop body
LE: loop exit
PB: predicated region body
PF: predicated region fallthrough
CT: control target
= control target key end

     0   :  { %s859_s25 = smov 111   ;;  %s860_s30 = smov 112   ;;  %v866_v4 = vmov 0.0   ;;  %v867_v5 = vmov 0   ;;  %v57_v7 = vlaneseq  ;;  %vm313_vm0 = vcmask 908288   ;;  %s1393_s0 = inlined_call_operand.vmem [shape: f32[1,8,512], index: 0, kind: input, shape index: {}]   ;;  %s1394_s3 = inlined_call_operand.vmem [shape: f32[8,1], index: 3, kind: input, shape index: {}]   ;;  %s1395_s1 = inlined_call_operand.vmem [shape: f32[9,512], index: 1, kind: input, shape index: {}]   ;;  %s1396_s2 = inlined_call_operand.vmem [shape: f32[8,72], index: 2, kind: input, shape index: {}]   ;;  %s1397_s5 = inlined_call_operand.vmem [shape: f32[8,1], index: 5, kind: input, shape index: {}]   ;;  %s1398_s4 = inlined_call_operand.vmem [shape: f32[8,72], index: 4, kind: input, shape index: {}]   ;;  %s1399_s6 = inlined_call_operand.vmem [shape: f32[8,512], index: 6, kind: output, shape index: {}]  }
   0x1   :  { %v907_v0 = vld [vmem:[%s1393_s0 + $0x10] sm:$0xff]  ;;  %v912_v1 = vld [vmem:[%s1393_s0] sm:$0xff]  ;;  %v921_v2 = vld [vmem:[%s1393_s0 + $0x18] sm:$0xff]  ;;  %s862_s7 = smov 127   ;;  %s863_s8 = smov 1   ;;  %418 = vmatprep.mubr.f32.mxu0 %v866_v4  ;;  %489 = vmatprep.mubr.f32.mxu1 %v866_v4  ;;  %vm275_vm1 = vcmask 916480  }
   0x2   :  { %309 = vrot.lane.b32.xlu1 %v907_v0, %s859_s25  ;;  %305 = vrot.lane.b32.xlu0 %v912_v1, %s859_s25  ;;  %1401 = vst [vmem:[#allocation2_spill] sm:$0xff] %v921_v2  ;;  %v926_v3 = vld [vmem:[%s1393_s0 + $0x8] sm:$0xff]  ;;  %s861_s0 = smov 113   ;;  %s864_s9 = smov 15   ;;  %v344_v6 = vld [vmem:[%s1394_s3] sm:$0xff]  ;;  %v998_v11 = vshrl.u32 %v57_v7, 7 }
   0x3   :  { %s865_s10 = smov 16   ;;  %858 = vset.pattern.permute.xlu0 %v867_v5  ;;  %s868_s11 = smov 17   ;;  %v996_v10 = vld [vmem:[%s1395_s1 + $0x28] ss:$0 sm:$0xff]  ;;  %v1003_v12 = vld [vmem:[%s1395_s1 + $0x38] ss:$0 sm:$0xff] }
   0x4   :  { %v1008_v13 = vld [vmem:[%s1395_s1 + $0x20] ss:$0 sm:$0xff]  ;;  %v1013_v14 = vld [vmem:[%s1395_s1 + $0x30] ss:$0 sm:$0xff]  ;;  %v287_v25 = vsub.s32 7, %v998_v11  ;;  %v1027_v26 = vld [vmem:[%s1395_s1 + $0x18] sm:$0xff] }
   0x5   :  { %v1032_v27 = vld [vmem:[%s1395_s1 + $0x8] sm:$0xff]  ;;  %v1037_v28 = vld [vmem:[%s1395_s1 + $0x10] sm:$0xff]  ;;  %v1042_v30 = vld [vmem:[%s1395_s1] sm:$0xff]  ;;  %v249_v46 = vsub.s32 6, %v998_v11  ;;  %vm237_vm2 = vcmask 924672   ;;  %v211_v63 = vsub.s32 5, %v998_v11 }
   0x6   :  { %311 = vrot.lane.b32.xlu1 %v921_v2, %s859_s25  ;;  %307 = vrot.lane.b32.xlu0 %v926_v3, %s859_s25  ;;  %v1045_v32 = vrot.slane %v1027_v26, %v287_v25  ;;  %v1048_v33 = vrot.slane %v1032_v27, %v287_v25  ;;  %v1051_v34 = vrot.slane %v1037_v28, %v287_v25  ;;  %vm199_vm3 = vcmask 1039360  }
   0x7   :  { %v1054_v35 = vrot.slane %v1042_v30, %v287_v25  ;;  %v1066_v49 = vrot.slane %v1027_v26, %v249_v46  ;;  %v1069_v50 = vrot.slane %v1032_v27, %v249_v46  ;;  %v1072_v51 = vrot.slane %v1037_v28, %v249_v46 }
   0x8   :  { %v1075_v52 = vrot.slane %v1042_v30, %v249_v46  ;;  %v1087_v7 = vrot.slane %v1027_v26, %v211_v63  ;;  %vm162_vm4 = vcmask 7168   ;;  %vm124_vm5 = vcmask 121856  }
   0x9   :  { %vm86_vm6 = vcmask 130048   ;;  %vm48_vm7 = vcmask 138240   ;;  %vm350_vm8 = vcmask 588800  }
   0xa   :  { %269 = vrot.lane.b32.xlu1 %v926_v3, %s860_s30  ;;  %267 = vrot.lane.b32.xlu0 %v912_v1, %s860_s30 }
   0xe   :  { %273 = vrot.lane.b32.xlu1 %v921_v2, %s860_s30  ;;  %271 = vrot.lane.b32.xlu0 %v907_v0, %s860_s30 }
  0x12   :  { %231 = vrot.lane.b32.xlu1 %v926_v3, %s861_s0  ;;  %229 = vrot.lane.b32.xlu0 %v912_v1, %s861_s0 }
  0x16   :  { %235 = vrot.lane.b32.xlu1 %v921_v2, %s861_s0  ;;  %233 = vrot.lane.b32.xlu0 %v907_v0, %s861_s0 }
  0x1a   :  { %193 = vrot.lane.b32.xlu1 %v926_v3, %s862_s7  ;;  %191 = vrot.lane.b32.xlu0 %v912_v1, %s862_s7 }
  0x1e   :  { %197 = vrot.lane.b32.xlu1 %v921_v2, %s862_s7  ;;  %195 = vrot.lane.b32.xlu0 %v907_v0, %s862_s7 }
  0x22   :  { %156 = vrot.lane.b32.xlu1 %v912_v1, %s863_s8  ;;  %153 = vrot.lane.b32.xlu0 %v921_v2, %s863_s8 }
  0x26   :  { %160 = vrot.lane.b32.xlu1 %v907_v0, %s863_s8  ;;  %158 = vrot.lane.b32.xlu0 %v926_v3, %s863_s8 }
  0x2a   :  { %118 = vrot.lane.b32.xlu1 %v912_v1, %s864_s9  ;;  %115 = vrot.lane.b32.xlu0 %v921_v2, %s864_s9 }
  0x2e   :  { %122 = vrot.lane.b32.xlu1 %v907_v0, %s864_s9  ;;  %120 = vrot.lane.b32.xlu0 %v926_v3, %s864_s9 }
  0x32   :  { %80 = vrot.lane.b32.xlu1 %v912_v1, %s865_s10  ;;  %77 = vrot.lane.b32.xlu0 %v921_v2, %s865_s10 }
  0x36   :  { %84 = vrot.lane.b32.xlu1 %v907_v0, %s865_s10  ;;  %82 = vrot.lane.b32.xlu0 %v926_v3, %s865_s10 }
  0x3a   :  { %42 = vrot.lane.b32.xlu1 %v912_v1, %s868_s11  ;;  %36 = vrot.lane.b32.xlu0 %v921_v2, %s868_s11 }
  0x3e   :  { %46 = vrot.lane.b32.xlu1 %v907_v0, %s868_s11  ;;  %44 = vrot.lane.b32.xlu0 %v926_v3, %s868_s11 }
  0x42   :  { %347 = vperm.xlu0 %858, %v344_v6  }
  0x74   :  { %v310_v8 = vpop.permute.xlu1 %309  ;;  %v306_v9 = vpop.permute.xlu0 %305 }
  0x78   :  { %v312_v15 = vpop.permute.xlu1 %311  ;;  %v308_v16 = vpop.permute.xlu0 %307 }
  0x79   :  { %v316_v17 = vsel %vm313_vm0, %v310_v8, %v312_v15  ;;  %v314_v18 = vsel %vm313_vm0, %v306_v9, %v308_v16  ;;  %v315_v19 = vsel %vm313_vm0, %v308_v16, %v310_v8  ;;  %v322_v20 = vsel %vm313_vm0, %v312_v15, %v306_v9 }
  0x7a   :  { %v340_v21 = vmul.f32 %v996_v10, %v315_v19  ;;  %v342_v22 = vmul.f32 %v1003_v12, %v322_v20  ;;  %v339_v23 = vmul.f32 %v1008_v13, %v314_v18  ;;  %v341_v24 = vmul.f32 %v1013_v14, %v316_v17 }
  0x7b   :  { %v1090_v8 = vrot.slane %v1032_v27, %v211_v63  ;;  %v1093_v9 = vrot.slane %v1037_v28, %v211_v63  ;;  %v1096_v15 = vrot.slane %v1042_v30, %v211_v63 }
  0x7c   :  { %v270_v29 = vpop.permute.xlu1 %269  ;;  %368 = vmatprep.subr.mxu0 %v340_v21  ;;  %439 = vmatprep.subr.mxu1 %v342_v22  ;;  %v268_v31 = vpop.permute.xlu0 %267 }
  0x7d   :  { %369 = vmatpush1.msra.mxu0 %v339_v23  ;;  %440 = vmatpush1.msra.mxu1 %v341_v24  ;;  %v276_v36 = vsel %vm275_vm1, %v268_v31, %v270_v29 }
  0x7e   :  { %v301_v45 = vmul.f32 %v1054_v35, %v276_v36 }
  0x80   :  { %v274_v37 = vpop.permute.xlu1 %273  ;;  %v272_v38 = vpop.permute.xlu0 %271 }
  0x81   :  { %v284_v39 = vsel %vm275_vm1, %v274_v37, %v268_v31  ;;  %v277_v40 = vsel %vm275_vm1, %v270_v29, %v272_v38  ;;  %v278_v41 = vsel %vm275_vm1, %v272_v38, %v274_v37  ;;  %v173_v29 = vsub.s32 3, %v998_v11 }
  0x82   :  { %v304_v42 = vmul.f32 %v1045_v32, %v284_v39  ;;  %v302_v43 = vmul.f32 %v1048_v33, %v277_v40  ;;  %v303_v44 = vmul.f32 %v1051_v34, %v278_v41 }
  0x83   :  { %v1108_v37 = vrot.slane %v1027_v26, %v173_v29  ;;  %v1111_v38 = vrot.slane %v1032_v27, %v173_v29  ;;  %v1114_v39 = vrot.slane %v1037_v28, %v173_v29  ;;  %v1119_v40 = vrot.slane %v1042_v30, %v173_v29 }
  0x84   :  { %v232_v47 = vpop.permute.xlu1 %231  ;;  %370 = vmatprep.subr.mxu0 %v302_v43  ;;  %441 = vmatprep.subr.mxu1 %v304_v42  ;;  %v230_v48 = vpop.permute.xlu0 %229 }
  0x85   :  { %371 = vmatpush1.msra.mxu0 %v301_v45  ;;  %442 = vmatpush1.msra.mxu1 %v303_v44  ;;  %v238_v53 = vsel %vm237_vm2, %v230_v48, %v232_v47 }
  0x86   :  { %v263_v62 = vmul.f32 %v1075_v52, %v238_v53 }
  0x88   :  { %v236_v54 = vpop.permute.xlu1 %235  ;;  %v234_v55 = vpop.permute.xlu0 %233 }
  0x89   :  { %v246_v56 = vsel %vm237_vm2, %v236_v54, %v230_v48  ;;  %v239_v57 = vsel %vm237_vm2, %v232_v47, %v234_v55  ;;  %v240_v58 = vsel %vm237_vm2, %v234_v55, %v236_v54  ;;  %v135_v55 = vsub.s32 2, %v998_v11 }
  0x8a   :  { %v266_v59 = vmul.f32 %v1066_v49, %v246_v56  ;;  %v264_v60 = vmul.f32 %v1069_v50, %v239_v57  ;;  %v265_v61 = vmul.f32 %v1072_v51, %v240_v58 }
  0x8b   :  { %v1133_v58 = vrot.slane %v1027_v26, %v135_v55 }
  0x8c   :  { %v194_v5 = vpop.permute.xlu1 %193  ;;  %372 = vmatprep.subr.mxu0 %v264_v60  ;;  %443 = vmatprep.subr.mxu1 %v266_v59  ;;  %v192_v6 = vpop.permute.xlu0 %191  ;;  %v1136_v59 = vrot.slane %v1032_v27, %v135_v55  ;;  %v1139_v60 = vrot.slane %v1037_v28, %v135_v55 }
  0x8d   :  { %373 = vmatpush1.msra.mxu0 %v263_v62  ;;  %444 = vmatpush1.msra.mxu1 %v265_v61  ;;  %v200_v16 = vsel %vm199_vm3, %v192_v6, %v194_v5  ;;  %v1142_v61 = vrot.slane %v1042_v30, %v135_v55  ;;  %v59_v55 = vsub.s32 0, %v998_v11 }
  0x8e   :  { %v225_v25 = vmul.f32 %v1096_v15, %v200_v16 }
  0x90   :  { %v198_v17 = vpop.permute.xlu1 %197  ;;  %v196_v18 = vpop.permute.xlu0 %195 }
  0x91   :  { %v208_v19 = vsel %vm199_vm3, %v198_v17, %v192_v6  ;;  %v201_v20 = vsel %vm199_vm3, %v194_v5, %v196_v18  ;;  %v202_v21 = vsel %vm199_vm3, %v196_v18, %v198_v17 }
  0x92   :  { %v228_v22 = vmul.f32 %v1087_v7, %v208_v19  ;;  %v226_v23 = vmul.f32 %v1090_v8, %v201_v20  ;;  %v227_v24 = vmul.f32 %v1093_v9, %v202_v21 }
  0x94   :  { %v157_v31 = vpop.permute.xlu1 %156  ;;  %374 = vmatprep.subr.mxu0 %v226_v23  ;;  %445 = vmatprep.subr.mxu1 %v228_v22  ;;  %v154_v36 = vpop.permute.xlu0 %153  ;;  %v97_v22 = vsub.s32 1, %v998_v11 }
  0x95   :  { %375 = vmatpush1.msra.mxu0 %v225_v25  ;;  %446 = vmatpush1.msra.mxu1 %v227_v24  ;;  %v170_v41 = vsel %vm162_vm4, %v154_v36, %v157_v31 }
  0x96   :  { %376 = vmatprep.subr.mxu0 %v926_v3  ;;  %447 = vmatprep.subr.mxu1 %v921_v2  ;;  %v187_v54 = vmul.f32 %v1119_v40, %v170_v41  ;;  %v1154_v25 = vrot.slane %v1027_v26, %v97_v22  ;;  %v1157_v29 = vrot.slane %v1032_v27, %v97_v22 }
  0x97   :  { %377 = vmatpush1.msra.mxu0 %v912_v1  ;;  %448 = vmatpush1.msra.mxu1 %v907_v0 }
  0x98   :  { %v161_v42 = vpop.permute.xlu1 %160  ;;  %v159_v43 = vpop.permute.xlu0 %158 }
  0x99   :  { %v165_v44 = vsel %vm162_vm4, %v161_v42, %v154_v36  ;;  %v163_v45 = vsel %vm162_vm4, %v157_v31, %v159_v43  ;;  %v164_v46 = vsel %vm162_vm4, %v159_v43, %v161_v42  ;;  %v1160_v31 = vrot.slane %v1037_v28, %v97_v22 }
  0x9a   :  { %v190_v47 = vmul.f32 %v1108_v37, %v165_v44  ;;  %v188_v48 = vmul.f32 %v1111_v38, %v163_v45  ;;  %v189_v53 = vmul.f32 %v1114_v39, %v164_v46  ;;  %v1163_v36 = vrot.slane %v1042_v30, %v97_v22 }
  0x9c   :  { %v119_v56 = vpop.permute.xlu1 %118  ;;  %378 = vmatprep.subr.mxu0 %v188_v48  ;;  %449 = vmatprep.subr.mxu1 %v190_v47  ;;  %v116_v57 = vpop.permute.xlu0 %115 }
  0x9d   :  { %379 = vmatpush1.msra.mxu0 %v187_v54  ;;  %450 = vmatpush1.msra.mxu1 %v189_v53  ;;  %v132_v62 = vsel %vm124_vm5, %v116_v57, %v119_v56 }
  0x9e   :  { %v149_v21 = vmul.f32 %v1142_v61, %v132_v62  ;;  %v1175_v62 = vrot.slane %v1027_v26, %v59_v55 }
  0xa0   :  { %v123_v63 = vpop.permute.xlu1 %122  ;;  %v121_v5 = vpop.permute.xlu0 %120 }
  0xa1   :  { %v127_v6 = vsel %vm124_vm5, %v123_v63, %v116_v57  ;;  %v125_v16 = vsel %vm124_vm5, %v119_v56, %v121_v5  ;;  %v126_v17 = vsel %vm124_vm5, %v121_v5, %v123_v63  ;;  %v1178_v63 = vrot.slane %v1032_v27, %v59_v55 }
  0xa2   :  { %v152_v18 = vmul.f32 %v1133_v58, %v127_v6  ;;  %v150_v19 = vmul.f32 %v1136_v59, %v125_v16  ;;  %v151_v20 = vmul.f32 %v1139_v60, %v126_v17  ;;  %v1181_v5 = vrot.slane %v1037_v28, %v59_v55 }
  0xa3   :  { %v1184_v6 = vrot.slane %v1042_v30, %v59_v55  ;;  %v343_v30 = vld [vmem:[%s1396_s2] sm:$0xff] }
  0xa4   :  { %v81_v23 = vpop.permute.xlu1 %80  ;;  %380 = vmatprep.subr.mxu0 %v150_v19  ;;  %451 = vmatprep.subr.mxu1 %v152_v18  ;;  %v78_v24 = vpop.permute.xlu0 %77 }
  0xa5   :  { %381 = vmatpush1.msra.mxu0 %v149_v21  ;;  %452 = vmatpush1.msra.mxu1 %v151_v20  ;;  %v94_v41 = vsel %vm86_vm6, %v78_v24, %v81_v23 }
  0xa6   :  { %v111_v54 = vmul.f32 %v1163_v36, %v94_v41 }
  0xa8   :  { %v85_v42 = vpop.permute.xlu1 %84  ;;  %v83_v43 = vpop.permute.xlu0 %82 }
  0xa9   :  { %v89_v44 = vsel %vm86_vm6, %v85_v42, %v78_v24  ;;  %v87_v45 = vsel %vm86_vm6, %v81_v23, %v83_v43  ;;  %v88_v46 = vsel %vm86_vm6, %v83_v43, %v85_v42 }
  0xaa   :  { %v114_v47 = vmul.f32 %v1154_v25, %v89_v44  ;;  %v112_v48 = vmul.f32 %v1157_v29, %v87_v45  ;;  %v113_v53 = vmul.f32 %v1160_v31, %v88_v46 }
  0xac   :  { %v43_v56 = vpop.permute.xlu1 %42  ;;  %382 = vmatprep.subr.mxu0 %v112_v48  ;;  %453 = vmatprep.subr.mxu1 %v114_v47  ;;  %v37_v57 = vpop.permute.xlu0 %36 }
  0xad   :  { %383 = vmatpush1.msra.mxu0 %v111_v54  ;;  %454 = vmatpush1.msra.mxu1 %v113_v53  ;;  %v56_v11 = vsel %vm48_vm7, %v37_v57, %v43_v56  ;;  %v673_v54 = vld [vmem:[%s1397_s5] sm:$0xff] }
  0xae   :  { %v73_v21 = vmul.f32 %v1184_v6, %v56_v11 }
  0xb0   :  { %v47_v16 = vpop.permute.xlu1 %46  ;;  %v45_v17 = vpop.permute.xlu0 %44 }
  0xb1   :  { %v51_v18 = vsel %vm48_vm7, %v47_v16, %v37_v57  ;;  %v49_v19 = vsel %vm48_vm7, %v43_v56, %v45_v17  ;;  %v50_v26 = vsel %vm48_vm7, %v45_v17, %v47_v16 }
  0xb2   :  { %v76_v20 = vmul.f32 %v1175_v62, %v51_v18  ;;  %v74_v27 = vmul.f32 %v1178_v63, %v49_v19  ;;  %v75_v28 = vmul.f32 %v1181_v5, %v50_v26 }
  0xb4   :  { %384 = vmatprep.subr.mxu0 %v74_v27  ;;  %455 = vmatprep.subr.mxu1 %v76_v20 }
  0xb5   :  { %385 = vmatpush1.msra.mxu0 %v73_v21  ;;  %456 = vmatpush1.msra.mxu1 %v75_v28 }
  0xb6   :  { %844 = vmatmul.mubr.msk.f32.vlgmr.msra.gmra.mxu0 %vm350_vm8, %v343_v30  ;;  %845 = vmatmul.mubr.msk.f32.vlgmr.msra.gmra.mxu1 %vm350_vm8, %v343_v30 }
  0xb7   :  { %746 = vmatprep.mubr.f32.mxu0 %v866_v4  ;;  %817 = vmatprep.mubr.f32.mxu1 %v866_v4 }
  0xbd   :  { %v348_v22 = vpop.permute.xlu0 %347 }
 0x176   :  { %v420_v23 = vpop.f32.mrf.mxu0  ;;  %v491_v24 = vpop.f32.mrf.mxu1 }
 0x177   :  { %v421_v41 = vadd.f32 %v420_v23, %v348_v22  ;;  %v492_v42 = vadd.f32 %v491_v24, %v348_v22 }
 0x178   :  { %v422_v4 = vpop.f32.mrf.mxu0  ;;  %v493_v46 = vpop.f32.mrf.mxu1 }
 0x179   :  { %v1201_v43 = vmax.f32 %v421_v41, 0.0  ;;  %v1203_v44 = vmax.f32 %v492_v42, 0.0  ;;  %v423_v45 = vadd.f32 %v422_v4, %v348_v22  ;;  %v494_v48 = vadd.f32 %v493_v46, %v348_v22 }
 0x17b   :  { %655 = vrot.lane.b32.xlu0 %v1203_v44, %s859_s25  ;;  %651 = vrot.lane.b32.xlu1 %v1201_v43, %s859_s25  ;;  %v1229_v47 = vmax.f32 %v423_v45, 0.0  ;;  %v1235_v53 = vmax.f32 %v494_v48, 0.0 }
 0x17f   :  { %630 = vrot.lane.b32.xlu0 %v1201_v43, %s860_s30  ;;  %570 = vrot.lane.b32.xlu1 %v1201_v43, %s863_s8 }
 0x183   :  { %634 = vrot.lane.b32.xlu0 %v1203_v44, %s860_s30  ;;  %574 = vrot.lane.b32.xlu1 %v1203_v44, %s863_s8 }
 0x187   :  { %609 = vrot.lane.b32.xlu0 %v1201_v43, %s861_s0  ;;  %549 = vrot.lane.b32.xlu1 %v1201_v43, %s864_s9 }
 0x18b   :  { %613 = vrot.lane.b32.xlu0 %v1203_v44, %s861_s0  ;;  %553 = vrot.lane.b32.xlu1 %v1203_v44, %s864_s9 }
 0x18f   :  { %588 = vrot.lane.b32.xlu0 %v1201_v43, %s862_s7  ;;  %528 = vrot.lane.b32.xlu1 %v1201_v43, %s865_s10 }
 0x193   :  { %592 = vrot.lane.b32.xlu0 %v1203_v44, %s862_s7  ;;  %653 = vrot.lane.b32.xlu1 %v1229_v47, %s859_s25 }
 0x197   :  { %567 = vrot.lane.b32.xlu0 %v1235_v53, %s863_s8  ;;  %657 = vrot.lane.b32.xlu1 %v1235_v53, %s859_s25 }
 0x19b   :  { %572 = vrot.lane.b32.xlu0 %v1229_v47, %s863_s8  ;;  %632 = vrot.lane.b32.xlu1 %v1229_v47, %s860_s30 }
 0x19f   :  { %546 = vrot.lane.b32.xlu0 %v1235_v53, %s864_s9  ;;  %636 = vrot.lane.b32.xlu1 %v1235_v53, %s860_s30 }
 0x1a3   :  { %551 = vrot.lane.b32.xlu0 %v1229_v47, %s864_s9  ;;  %611 = vrot.lane.b32.xlu1 %v1229_v47, %s861_s0 }
 0x1a7   :  { %525 = vrot.lane.b32.xlu0 %v1235_v53, %s865_s10  ;;  %615 = vrot.lane.b32.xlu1 %v1235_v53, %s861_s0 }
 0x1ab   :  { %530 = vrot.lane.b32.xlu0 %v1229_v47, %s865_s10  ;;  %590 = vrot.lane.b32.xlu1 %v1229_v47, %s862_s7 }
 0x1af   :  { %501 = vrot.lane.b32.xlu0 %v1235_v53, %s868_s11  ;;  %594 = vrot.lane.b32.xlu1 %v1235_v53, %s862_s7 }
 0x1b3   :  { %509 = vrot.lane.b32.xlu0 %v1229_v47, %s868_s11  ;;  %532 = vrot.lane.b32.xlu1 %v1203_v44, %s865_s10 }
 0x1b7   :  { %676 = vperm.xlu0 %858, %v673_v54   ;;  %507 = vrot.lane.b32.xlu1 %v1201_v43, %s868_s11 }
 0x1bb   :  { %511 = vrot.lane.b32.xlu1 %v1203_v44, %s868_s11 }
 0x1ed   :  { %v656_v55 = vpop.permute.xlu0 %655  ;;  %v652_v56 = vpop.permute.xlu1 %651 }
 0x1f1   :  { %v631_v57 = vpop.permute.xlu0 %630  ;;  %v1276_v11 = vpop.permute.xlu1 %570 }
 0x1f5   :  { %v635_v16 = vpop.permute.xlu0 %634  ;;  %v1278_v17 = vpop.permute.xlu1 %574 }
 0x1f9   :  { %v610_v18 = vpop.permute.xlu0 %609  ;;  %v1280_v19 = vpop.permute.xlu1 %549 }
 0x1fd   :  { %v614_v26 = vpop.permute.xlu0 %613  ;;  %v1282_v20 = vpop.permute.xlu1 %553 }
 0x201   :  { %v1284_v27 = vpop.permute.xlu0 %588  ;;  %v1286_v28 = vpop.permute.xlu1 %528 }
 0x205   :  { %v593_v21 = vpop.permute.xlu0 %592  ;;  %v654_v30 = vpop.permute.xlu1 %653 }
 0x206   :  { %v659_v22 = vsel %vm313_vm0, %v652_v56, %v654_v30  ;;  %v660_v23 = vsel %vm313_vm0, %v654_v30, %v656_v55 }
 0x207   :  { %v668_v24 = vmul.f32 %v1008_v13, %v659_v22  ;;  %v669_v41 = vmul.f32 %v996_v10, %v660_v23 }
 0x209   :  { %v1292_v42 = vpop.permute.xlu0 %567  ;;  %696 = vmatprep.subr.mxu0 %v669_v41  ;;  %v658_v4 = vpop.permute.xlu1 %657 }
 0x20a   :  { %v661_v45 = vsel %vm313_vm0, %v656_v55, %v658_v4  ;;  %v667_v46 = vsel %vm313_vm0, %v658_v4, %v652_v56  ;;  %697 = vmatpush1.msra.mxu0 %v668_v24 }
 0x20b   :  { %v670_v48 = vmul.f32 %v1013_v14, %v661_v45  ;;  %v671_v54 = vmul.f32 %v1003_v12, %v667_v46 }
 0x20d   :  { %v573_v2 = vpop.permute.xlu0 %572  ;;  %767 = vmatprep.subr.mxu1 %v671_v54  ;;  %v633_v30 = vpop.permute.xlu1 %632 }
 0x20e   :  { %v638_v13 = vsel %vm275_vm1, %v631_v57, %v633_v30  ;;  %v639_v10 = vsel %vm275_vm1, %v633_v30, %v635_v16  ;;  %768 = vmatpush1.msra.mxu1 %v670_v48 }
 0x20f   :  { %v647_v22 = vmul.f32 %v638_v13, %v1054_v35  ;;  %v648_v23 = vmul.f32 %v639_v10, %v1048_v33 }
 0x211   :  { %v547_v55 = vpop.permute.xlu0 %546  ;;  %698 = vmatprep.subr.mxu0 %v648_v23  ;;  %v637_v56 = vpop.permute.xlu1 %636 }
 0x212   :  { %v640_v24 = vsel %vm275_vm1, %v635_v16, %v637_v56  ;;  %v646_v14 = vsel %vm275_vm1, %v637_v56, %v631_v57  ;;  %699 = vmatpush1.msra.mxu0 %v647_v22 }
 0x213   :  { %v649_v12 = vmul.f32 %v640_v24, %v1051_v34  ;;  %v650_v41 = vmul.f32 %v646_v14, %v1045_v32 }
 0x215   :  { %v552_v4 = vpop.permute.xlu0 %551  ;;  %769 = vmatprep.subr.mxu1 %v650_v41  ;;  %v612_v45 = vpop.permute.xlu1 %611 }
 0x216   :  { %v617_v46 = vsel %vm237_vm2, %v610_v18, %v612_v45  ;;  %v618_v35 = vsel %vm237_vm2, %v612_v45, %v614_v26  ;;  %770 = vmatpush1.msra.mxu1 %v649_v12  ;;  %v555_v23 = vsel %vm124_vm5, %v1280_v19, %v552_v4 }
 0x217   :  { %v626_v33 = vmul.f32 %v617_v46, %v1075_v52  ;;  %v627_v48 = vmul.f32 %v618_v35, %v1069_v50 }
 0x219   :  { %v526_v16 = vpop.permute.xlu0 %525  ;;  %700 = vmatprep.subr.mxu0 %v627_v48  ;;  %v616_v57 = vpop.permute.xlu1 %615 }
 0x21a   :  { %v619_v54 = vsel %vm237_vm2, %v614_v26, %v616_v57  ;;  %v625_v34 = vsel %vm237_vm2, %v616_v57, %v610_v18  ;;  %701 = vmatpush1.msra.mxu0 %v626_v33  ;;  %v576_v18 = vsel %vm162_vm4, %v1276_v11, %v573_v2 }
 0x21b   :  { %v628_v32 = vmul.f32 %v619_v54, %v1072_v51  ;;  %v629_v30 = vmul.f32 %v625_v34, %v1066_v49  ;;  %v583_v49 = vsel %vm162_vm4, %v1292_v42, %v1276_v11 }
 0x21c   :  { %v584_v41 = vmul.f32 %v583_v49, %v1119_v40 }
 0x21d   :  { %v531_v13 = vpop.permute.xlu0 %530  ;;  %771 = vmatprep.subr.mxu1 %v629_v30  ;;  %v591_v10 = vpop.permute.xlu1 %590 }
 0x21e   :  { %v596_v52 = vsel %vm199_vm3, %v1284_v27, %v591_v10  ;;  %v597_v50 = vsel %vm199_vm3, %v591_v10, %v593_v21  ;;  %772 = vmatpush1.msra.mxu1 %v628_v32 }
 0x21f   :  { %v605_v22 = vmul.f32 %v596_v52, %v1096_v15  ;;  %v606_v26 = vmul.f32 %v597_v50, %v1090_v8  ;;  %v585_v8 = vmul.f32 %v576_v18, %v1111_v38  ;;  %v562_v15 = vsel %vm124_vm5, %v547_v55, %v1280_v19  ;;  %v1402_v52 = vld [vmem:[#allocation2_spill] sm:$0xff] }
 0x220   :  { %v577_v38 = vsel %vm162_vm4, %v573_v2, %v1278_v17  ;;  %v557_v19 = vsel %vm124_vm5, %v1282_v20, %v547_v55  ;;  %v563_v40 = vmul.f32 %v562_v15, %v1142_v61  ;;  %v556_v2 = vsel %vm124_vm5, %v552_v4, %v1282_v20 }
 0x221   :  { %702 = vmatprep.subr.mxu0 %v606_v26  ;;  %v595_v51 = vpop.permute.xlu1 %594  ;;  %v502_v14 = vpop.permute.xlu0 %501  ;;  %v566_v61 = vmul.f32 %v557_v19, %v1133_v58  ;;  %v565_v20 = vmul.f32 %v556_v2, %v1139_v60  ;;  %v672_v60 = vld [vmem:[%s1398_s4] sm:$0xff] }
 0x222   :  { %v598_v56 = vsel %vm199_vm3, %v593_v21, %v595_v51  ;;  %v604_v24 = vsel %vm199_vm3, %v595_v51, %v1284_v27  ;;  %703 = vmatpush1.msra.mxu0 %v605_v22  ;;  %v578_v21 = vsel %vm162_vm4, %v1278_v17, %v1292_v42  ;;  %v534_v27 = vsel %vm86_vm6, %v1286_v28, %v531_v13 }
 0x223   :  { %v607_v12 = vmul.f32 %v598_v56, %v1093_v9  ;;  %v608_v11 = vmul.f32 %v604_v24, %v1087_v7  ;;  %704 = vmatprep.subr.mxu0 %v1229_v47  ;;  %v564_v9 = vmul.f32 %v555_v23, %v1136_v59  ;;  %v541_v7 = vsel %vm86_vm6, %v526_v16, %v1286_v28 }
 0x224   :  { %705 = vmatpush1.msra.mxu0 %v1201_v43  ;;  %v587_v43 = vmul.f32 %v578_v21, %v1108_v37  ;;  %v543_v59 = vmul.f32 %v534_v27, %v1157_v29  ;;  %v586_v17 = vmul.f32 %v577_v38, %v1114_v39  ;;  %v542_v28 = vmul.f32 %v541_v7, %v1163_v36 }
 0x225   :  { %706 = vmatprep.subr.mxu0 %v585_v8  ;;  %773 = vmatprep.subr.mxu1 %v608_v11  ;;  %v533_v47 = vpop.permute.xlu1 %532  ;;  %v510_v37 = vpop.permute.xlu0 %509 }
 0x226   :  { %707 = vmatpush1.msra.mxu0 %v584_v41  ;;  %774 = vmatpush1.msra.mxu1 %v607_v12  ;;  %v536_v42 = vsel %vm86_vm6, %v533_v47, %v526_v16  ;;  %v535_v55 = vsel %vm86_vm6, %v531_v13, %v533_v47 }
 0x227   :  { %708 = vmatprep.subr.mxu0 %v564_v9  ;;  %775 = vmatprep.subr.mxu1 %v1235_v53  ;;  %v545_v36 = vmul.f32 %v536_v42, %v1154_v25  ;;  %v544_v4 = vmul.f32 %v535_v55, %v1160_v31 }
 0x228   :  { %709 = vmatpush1.msra.mxu0 %v563_v40  ;;  %776 = vmatpush1.msra.mxu1 %v1203_v44 }
 0x229   :  { %710 = vmatprep.subr.mxu0 %v543_v59  ;;  %777 = vmatprep.subr.mxu1 %v587_v43  ;;  %v508_v29 = vpop.permute.xlu1 %507 }
 0x22a   :  { %v513_v53 = vsel %vm48_vm7, %v508_v29, %v510_v37  ;;  %v520_v39 = vsel %vm48_vm7, %v502_v14, %v508_v29  ;;  %711 = vmatpush1.msra.mxu0 %v542_v28  ;;  %778 = vmatpush1.msra.mxu1 %v586_v17 }
 0x22b   :  { %v521_v44 = vmul.f32 %v520_v39, %v1184_v6  ;;  %v522_v58 = vmul.f32 %v513_v53, %v1178_v63  ;;  %779 = vmatprep.subr.mxu1 %v566_v61 }
 0x22c   :  { %780 = vmatpush1.msra.mxu1 %v565_v20 }
 0x22d   :  { %712 = vmatprep.subr.mxu0 %v522_v58  ;;  %781 = vmatprep.subr.mxu1 %v545_v36  ;;  %v512_v45 = vpop.permute.xlu1 %511 }
 0x22e   :  { %v514_v46 = vsel %vm48_vm7, %v510_v37, %v512_v45  ;;  %v515_v35 = vsel %vm48_vm7, %v512_v45, %v502_v14  ;;  %713 = vmatpush1.msra.mxu0 %v521_v44  ;;  %782 = vmatpush1.msra.mxu1 %v544_v4 }
 0x22f   :  { %v523_v25 = vmul.f32 %v514_v46, %v1181_v5  ;;  %v524_v63 = vmul.f32 %v515_v35, %v1175_v62  ;;  %846 = vmatmul.mubr.msk.f32.vlgmr.msra.gmra.mxu0 %vm350_vm8, %v672_v60 }
 0x231   :  { %783 = vmatprep.subr.mxu1 %v524_v63 }
 0x232   :  { %784 = vmatpush1.msra.mxu1 %v523_v25  ;;  %v677_v31 = vpop.permute.xlu0 %676 }
 0x233   :  { %847 = vmatmul.mubr.msk.f32.vlgmr.msra.gmra.mxu1 %vm350_vm8, %v672_v60 }
 0x2ef   :  { %v748_v6 = vpop.f32.mrf.mxu0 }
 0x2f0   :  { %v749_v33 = vadd.f32 %v748_v6, %v677_v31 }
 0x2f1   :  { %v750_v48 = vpop.f32.mrf.mxu0 }
 0x2f2   :  { %v824_v16 = vadd.f32 %v749_v33, %v912_v1  ;;  %v751_v57 = vadd.f32 %v750_v48, %v677_v31 }
 0x2f3   :  { %v819_v54 = vpop.f32.mrf.mxu1 }
 0x2f4   :  { %v828_v34 = vmax.f32 %v824_v16, 0.0  ;;  %v825_v32 = vadd.f32 %v751_v57, %v926_v3  ;;  %v820_v5 = vadd.f32 %v819_v54, %v677_v31 }
 0x2f5   :  { %v821_v30 = vpop.f32.mrf.mxu1 }
 0x2f6   :  { %832 = vst [vmem:[%s1399_s6] sm:$0xff] %v828_v34  ;;  %v829_v62 = vmax.f32 %v825_v32, 0.0  ;;  %v826_v13 = vadd.f32 %v820_v5, %v907_v0  ;;  %v822_v10 = vadd.f32 %v821_v30, %v677_v31 }
 0x2f8   :  { %833 = vst [vmem:[%s1399_s6 + $0x8] sm:$0xff] %v829_v62  ;;  %v830_v1 = vmax.f32 %v826_v13, 0.0  ;;  %v827_v50 = vadd.f32 %v822_v10, %v1402_v52 }
 0x2fa   :  { %834 = vst [vmem:[%s1399_s6 + $0x10] sm:$0xff] %v830_v1  ;;  %v831_v3 = vmax.f32 %v827_v50, 0.0 }
 0x2fc   :  { %835 = vst [vmem:[%s1399_s6 + $0x18] sm:$0xff] %v831_v3 }

</bundles_post_ra>
